<compile_context>
chip_gen: v5e
topology: v5e:2x2
jax: 0.10.0
libtpu: 0.0.40
codegen_flags: <defaults>
</compile_context>

<pallas_src>
import functools

import jax
import jax.numpy as jnp
from jax.experimental import pallas as pl
from jax.experimental.pallas import tpu as pltpu


def _round_up(n, m):
    return (n + m - 1) // m * m


def _vib_kernel(x_ref, u_ref, w_ref, b_ref, feat_ref, kl_ref, *,
                f_pad, batch, block_m):
    i = pl.program_id(0)

    # Fused matmul for both linear layers: (bm, Fp) @ (Fp, 2*Fp), f32 accumulation.
    y = jnp.dot(x_ref[...], w_ref[...], preferred_element_type=jnp.float32)
    y = y + b_ref[...]                      # bias add in f32

    z_mean = y[:, :f_pad]
    z_log_var = y[:, f_pad:]

    # Reparameterization (f32 epilogue): feature = z_mean + exp(zlv / 2) * u
    feat = z_mean + jnp.exp(0.5 * z_log_var) * u_ref[...]
    feat_ref[...] = feat.astype(feat_ref.dtype)

    # KL partial sum for this batch block. Padded rows are masked out; padded feature
    # columns contribute exactly 0 (their z_mean and z_log_var are 0 -> 1+0-0-exp(0)=0).
    kl = 1.0 + z_log_var - z_mean * z_mean - jnp.exp(z_log_var)
    row = jax.lax.broadcasted_iota(jnp.int32, (block_m, 1), 0) + i * block_m
    kl = jnp.where(row < batch, kl, 0.0)
    kl_ref[...] = jnp.broadcast_to(jnp.sum(kl), kl_ref.shape)


def vib_forward(feature, w_mean, b_mean, w_var, b_var, *,
                u=None, training=True, reduction='sum',
                block_m=1024, compute_dtype=jnp.bfloat16):
    """VIB forward.

    feature: (B, F) input activations (float32).
    w_mean / w_var: (F, F) in PyTorch nn.Linear layout (out_features, in_features).
    b_mean / b_var: (F,)
    u: (B, F) uniform noise in [0, 1); required if training=True (torch.rand_like).
    Returns (feature_out (B, F) float32, kl_loss scalar).
    """
    if training and reduction != 'sum':
        # TODO(synk): elementwise (non-'sum') KL reduction is not implemented in the fused kernel.
        raise NotImplementedError("only reduction='sum' is supported")

    B, F = feature.shape
    Fp = _round_up(F, 128)
    cdt_size = jnp.dtype(compute_dtype).itemsize

    # Conservative VMEM estimate (double-buffered inputs/outputs + f32 body temporaries).
    def vmem_estimate(bm):
        ins = 2 * (bm * Fp * cdt_size          # x tile
                   + bm * Fp * 4               # u tile
                   + Fp * (2 * Fp) * cdt_size  # fused weights (resident)
                   + (2 * Fp) * 4)             # fused bias
        outs = 2 * (bm * Fp * 4 + 8 * 128 * 4)
        temps = 10 * bm * Fp * 4
        return ins + outs + temps

    # Batch tile: as large as possible (multiple of 8) under a 40 MiB budget
    # (safe against v7x's 64 MiB physical VMEM), ceil-div grid + zero padding.
    bm = min(_round_up(block_m, 8), _round_up(B, 8))
    while bm > 8 and vmem_estimate(bm) > (40 << 20):
        bm = max(8, _round_up(bm // 2, 8))
    Bp = _round_up(B, bm)
    grid_m = Bp // bm

    # ---- host-side packing / padding (lane-dense layouts) ----
    x_p = jnp.zeros((Bp, Fp), compute_dtype).at[:B, :F].set(feature.astype(compute_dtype))
    if training:
        if u is None:
            raise ValueError("training=True requires the uniform noise `u`")
        u_p = jnp.zeros((Bp, Fp), jnp.float32).at[:B, :F].set(u.astype(jnp.float32))
    else:
        u_p = jnp.zeros((Bp, Fp), jnp.float32)   # u = 0 in eval mode

    def pack_w(w):  # (out, in) torch layout -> padded (in, out)
        return jnp.zeros((Fp, Fp), compute_dtype).at[:F, :F].set(w.T.astype(compute_dtype))

    w_fused = jnp.concatenate([pack_w(w_mean), pack_w(w_var)], axis=1)        # (Fp, 2Fp)
    b_fused = jnp.concatenate([
        jnp.zeros((Fp,), jnp.float32).at[:F].set(b_mean.astype(jnp.float32)),
        jnp.zeros((Fp,), jnp.float32).at[:F].set(b_var.astype(jnp.float32)),
    ]).reshape(1, 2 * Fp)

    kernel = functools.partial(_vib_kernel, f_pad=Fp, batch=B, block_m=bm)

    flops = 2 * Bp * Fp * (2 * Fp) + 8 * Bp * Fp
    transcendentals = 2 * Bp * Fp
    bytes_accessed = (x_p.size * cdt_size + u_p.size * 4 + w_fused.size * cdt_size
                      + b_fused.size * 4 + Bp * Fp * 4 + grid_m * 8 * 128 * 4)

    feat_p, kl_parts = pl.pallas_call(
        kernel,
        out_shape=(
            jax.ShapeDtypeStruct((Bp, Fp), jnp.float32),
            jax.ShapeDtypeStruct((grid_m, 8, 128), jnp.float32),
        ),
        grid_spec=pltpu.PrefetchScalarGridSpec(
            num_scalar_prefetch=0,
            grid=(grid_m,),
            in_specs=[
                pl.BlockSpec((bm, Fp), lambda i: (i, 0)),        # x tile
                pl.BlockSpec((bm, Fp), lambda i: (i, 0)),        # u tile
                pl.BlockSpec((Fp, 2 * Fp), lambda i: (0, 0)),    # fused W (resident)
                pl.BlockSpec((1, 2 * Fp), lambda i: (0, 0)),     # fused bias
            ],
            out_specs=(
                pl.BlockSpec((bm, Fp), lambda i: (i, 0)),        # feature out (lane-dense)
                pl.BlockSpec((1, 8, 128), lambda i: (i, 0, 0)),  # KL partial sums
            ),
        ),
        compiler_params=pltpu.CompilerParams(
            dimension_semantics=("parallel",),
            vmem_limit_bytes=int(max(vmem_estimate(bm) + (8 << 20), 32 << 20)),
        ),
        cost_estimate=pl.CostEstimate(
            flops=int(flops),
            transcendentals=int(transcendentals),
            bytes_accessed=int(bytes_accessed),
        ),
    )(x_p, u_p, w_fused, b_fused)

    feat_out = feat_p[:B, :F]
    if training:
        kl_loss = -0.5 * kl_parts[:, 0, 0].sum() / B
    else:
        kl_loss = 0.0
    return feat_out, kl_loss


def reference_vib(x, w_mean, b_mean, w_var, b_var, u, training=True,
                  compute_dtype=jnp.bfloat16):
    # Mirror the kernel's bf16 matmul-input rounding so the comparison stays tight.
    xr = x.astype(compute_dtype).astype(jnp.float32)
    wm = w_mean.astype(compute_dtype).astype(jnp.float32)
    wv = w_var.astype(compute_dtype).astype(jnp.float32)
    z_mean = xr @ wm.T + b_mean
    z_log_var = xr @ wv.T + b_var
    if training:
        kl = 1.0 + z_log_var - jnp.square(z_mean) - jnp.exp(z_log_var)
        kl_loss = -0.5 * kl.mean(0).sum()
        un = u
    else:
        kl_loss = 0.0
        un = 0.0
    feat = z_mean + jnp.exp(z_log_var / 2.0) * un
    return feat, kl_loss


if __name__ == "__main__":
    feature_dim = 128
    batch = 50          # deliberately NOT a multiple of 8: exercises padding + row masking

    key = jax.random.PRNGKey(0)
    kx, ku, kwm, kbm, kwv, kbv = jax.random.split(key, 6)

    bound = 1.0 / (feature_dim ** 0.5)   # PyTorch nn.Linear default init range
    w_mean = jax.random.uniform(kwm, (feature_dim, feature_dim), jnp.float32, -bound, bound)
    b_mean = jax.random.uniform(kbm, (feature_dim,), jnp.float32, -bound, bound)
    w_var = jax.random.uniform(kwv, (feature_dim, feature_dim), jnp.float32, -bound, bound)
    b_var = jax.random.uniform(kbv, (feature_dim,), jnp.float32, -bound, bound)

    x = jax.random.normal(kx, (batch, feature_dim), jnp.float32)
    # torch.rand_like(z_mean) equivalent (host-side, deterministic).
    u = jax.random.uniform(ku, (batch, feature_dim), jnp.float32)

    # --- training mode ---
    feat, kl_loss = vib_forward(x, w_mean, b_mean, w_var, b_var, u=u, training=True)
    feat = jax.block_until_ready(feat)
    kl_loss = jax.block_until_ready(kl_loss)

    feat_ref, kl_ref = reference_vib(x, w_mean, b_mean, w_var, b_var, u, training=True)
    assert feat.shape == (batch, feature_dim), feat.shape
    assert jnp.allclose(feat, feat_ref, atol=5e-3, rtol=5e-3), \
        float(jnp.max(jnp.abs(feat - feat_ref)))
    assert jnp.allclose(kl_loss, kl_ref, atol=5e-3, rtol=5e-3), (float(kl_loss), float(kl_ref))

    # --- eval mode: feature == z_mean, kl_loss == 0 ---
    feat_e, kl_e = vib_forward(x, w_mean, b_mean, w_var, b_var, training=False)
    feat_e = jax.block_until_ready(feat_e)
    feat_e_ref, _ = reference_vib(x, w_mean, b_mean, w_var, b_var, None, training=False)
    assert jnp.allclose(feat_e, feat_e_ref, atol=5e-3, rtol=5e-3)
    assert float(kl_e) == 0.0

    print("KERNEL_OK")
</pallas_src>

<mosaic_0001>
module attributes {stable_mosaic.version = 11 : i64} {
  func.func @_vib_kernel(%arg0: i32, %arg1: memref<56x128xbf16, #tpu.memory_space<vmem>>, %arg2: memref<56x128xf32, #tpu.memory_space<vmem>>, %arg3: memref<128x256xbf16, #tpu.memory_space<vmem>>, %arg4: memref<1x256xf32, #tpu.memory_space<vmem>>, %arg5: memref<56x128xf32, #tpu.memory_space<vmem>>, %arg6: memref<1x8x128xf32, #tpu.memory_space<vmem>>) attributes {dimension_semantics = [#tpu.dimension_semantics<parallel>], iteration_bounds = array<i64: 1>, scalar_prefetch = 0 : i64, scratch_operands = 0 : i64, tpu.core_type = #tpu.core_type<tc>, window_params = [{transform_indices = @transform_0, window_bounds = array<i64: 56, 128>}, {transform_indices = @transform_1, window_bounds = array<i64: 56, 128>}, {pipeline_mode = #tpu.pipeline_mode<synchronous>, transform_indices = @transform_2, window_bounds = array<i64: 128, 256>}, {pipeline_mode = #tpu.pipeline_mode<synchronous>, transform_indices = @transform_3, window_bounds = array<i64: 1, 256>}, {transform_indices = @transform_4, window_bounds = array<i64: 56, 128>}, {transform_indices = @transform_5, window_bounds = array<i64: 1, 8, 128>}]} {
    %c0 = arith.constant 0 : index
    %c0_0 = arith.constant 0 : index
    %0 = vector.load %arg1[%c0, %c0_0] : memref<56x128xbf16, #tpu.memory_space<vmem>>, vector<56x128xbf16>
    %c0_1 = arith.constant 0 : index
    %c0_2 = arith.constant 0 : index
    %1 = vector.load %arg3[%c0_1, %c0_2] : memref<128x256xbf16, #tpu.memory_space<vmem>>, vector<128x256xbf16>
    %cst = arith.constant dense<0.000000e+00> : vector<56x256xf32>
    %2 = tpu.matmul %0, %1, %cst {dimension_numbers = #tpu.dot_dimension_numbers<[1], [0], [0], [1], [0, 0, 1, 1], [], []>} : vector<56x128xbf16>, vector<128x256xbf16>, vector<56x256xf32> -> vector<56x256xf32>
    %c0_3 = arith.constant 0 : index
    %c0_4 = arith.constant 0 : index
    %3 = vector.load %arg4[%c0_3, %c0_4] : memref<1x256xf32, #tpu.memory_space<vmem>>, vector<1x256xf32>
    %4 = vector.broadcast %3 : vector<1x256xf32> to vector<56x256xf32>
    %5 = arith.addf %2, %4 : vector<56x256xf32>
    %6 = vector.extract_strided_slice %5 {offsets = [0, 0], sizes = [56, 128], strides = [1, 1]} : vector<56x256xf32> to vector<56x128xf32>
    %7 = vector.extract_strided_slice %5 {offsets = [0, 128], sizes = [56, 128], strides = [1, 1]} : vector<56x256xf32> to vector<56x128xf32>
    %cst_5 = arith.constant 5.000000e-01 : f32
    %8 = vector.broadcast %cst_5 : f32 to vector<56x128xf32>
    %9 = arith.mulf %8, %7 : vector<56x128xf32>
    %10 = math.exp %9 : vector<56x128xf32>
    %c0_6 = arith.constant 0 : index
    %c0_7 = arith.constant 0 : index
    %11 = vector.load %arg2[%c0_6, %c0_7] : memref<56x128xf32, #tpu.memory_space<vmem>>, vector<56x128xf32>
    %12 = arith.mulf %10, %11 : vector<56x128xf32>
    %13 = arith.addf %6, %12 : vector<56x128xf32>
    %c0_8 = arith.constant 0 : index
    %c0_9 = arith.constant 0 : index
    %14 = vector.load %arg5[%c0_8, %c0_9] : memref<56x128xf32, #tpu.memory_space<vmem>>, vector<56x128xf32>
    tpu.vector_store %arg5[%c0_8, %c0_9], %13 {strides = array<i32>} : memref<56x128xf32, #tpu.memory_space<vmem>>, vector<56x128xf32>,
    %cst_10 = arith.constant 1.000000e+00 : f32
    %15 = vector.broadcast %cst_10 : f32 to vector<56x128xf32>
    %16 = arith.addf %15, %7 : vector<56x128xf32>
    %17 = arith.mulf %6, %6 : vector<56x128xf32>
    %18 = arith.subf %16, %17 : vector<56x128xf32>
    %19 = math.exp %7 : vector<56x128xf32>
    %20 = arith.subf %18, %19 : vector<56x128xf32>
    %21 = tpu.iota {dimensions = array<i32: 0>} : vector<56x1xi32>
    %c56_i32 = arith.constant 56 : i32
    %22 = arith.muli %arg0, %c56_i32 : i32
    %23 = vector.broadcast %22 : i32 to vector<56x1xi32>
    %24 = arith.addi %21, %23 : vector<56x1xi32>
    %c50_i32 = arith.constant 50 : i32
    %25 = vector.broadcast %c50_i32 : i32 to vector<56x1xi32>
    %26 = arith.cmpi slt, %24, %25 : vector<56x1xi32>
    %cst_11 = arith.constant 0.000000e+00 : f32
    %27 = vector.shape_cast %26 : vector<56x1xi1> to vector<56x1xi1>
    %28 = vector.broadcast %27 : vector<56x1xi1> to vector<56x128xi1>
    %29 = vector.broadcast %cst_11 : f32 to vector<56x128xf32>
    %30 = arith.select %28, %20, %29 : vector<56x128xi1>, vector<56x128xf32>
    %31 = vector.shape_cast %30 : vector<56x128xf32> to vector<1x56x128xf32>
    %cst_12 = arith.constant dense<0.000000e+00> : vector<1xf32>
    %32 = vector.multi_reduction <add>, %31, %cst_12 [1, 2] : vector<1x56x128xf32> to vector<1xf32>
    %33 = vector.shape_cast %32 : vector<1xf32> to vector<1x1x1xf32>
    %34 = vector.extract %33[0, 0, 0] : f32 from vector<1x1x1xf32>
    %35 = vector.broadcast %34 : f32 to vector<1x8x128xf32>
    %c0_13 = arith.constant 0 : index
    %c0_14 = arith.constant 0 : index
    %c0_15 = arith.constant 0 : index
    %36 = vector.load %arg6[%c0_13, %c0_14, %c0_15] : memref<1x8x128xf32, #tpu.memory_space<vmem>>, vector<1x8x128xf32>
    tpu.vector_store %arg6[%c0_13, %c0_14, %c0_15], %35 {strides = array<i32>} : memref<1x8x128xf32, #tpu.memory_space<vmem>>, vector<1x8x128xf32>,
    return
  }
  func.func @transform_0(%arg0: i32) -> (i32, i32) {
    %c0_i32 = arith.constant 0 : i32
    %c0_i32_0 = arith.constant 0 : i32
    return %arg0, %c0_i32 : i32, i32
  }
  func.func @transform_1(%arg0: i32) -> (i32, i32) {
    %c0_i32 = arith.constant 0 : i32
    %c0_i32_0 = arith.constant 0 : i32
    return %arg0, %c0_i32 : i32, i32
  }
  func.func @transform_2(%arg0: i32) -> (i32, i32) {
    %c0_i32 = arith.constant 0 : i32
    %c0_i32_0 = arith.constant 0 : i32
    %c0_i32_1 = arith.constant 0 : i32
    return %c0_i32, %c0_i32_0 : i32, i32
  }
  func.func @transform_3(%arg0: i32) -> (i32, i32) {
    %c0_i32 = arith.constant 0 : i32
    %c0_i32_0 = arith.constant 0 : i32
    %c0_i32_1 = arith.constant 0 : i32
    return %c0_i32, %c0_i32_0 : i32, i32
  }
  func.func @transform_4(%arg0: i32) -> (i32, i32) {
    %c0_i32 = arith.constant 0 : i32
    %c0_i32_0 = arith.constant 0 : i32
    return %arg0, %c0_i32 : i32, i32
  }
  func.func @transform_5(%arg0: i32) -> (i32, i32, i32) {
    %c0_i32 = arith.constant 0 : i32
    %c0_i32_0 = arith.constant 0 : i32
    %c0_i32_1 = arith.constant 0 : i32
    return %arg0, %c0_i32, %c0_i32_0 : i32, i32, i32
  }
}

</mosaic_0001>

<bundles_post_ra>
// kernel: tpu_custom_call.1
= control target key start
LH: loop header
LB: loop body
LE: loop exit
PB: predicated region body
PF: predicated region fallthrough
CT: control target
= control target key end

     0   :  { %11 = vsyncpa [#allocation3], 0  ;;  %s822_s0 = inlined_call_operand.hbm [shape: bf16[56,128], index: 0, kind: input, shape index: {}]   ;;  %s823_s1 = inlined_call_operand.hbm [shape: f32[56,128], index: 1, kind: input, shape index: {}]   ;;  %s824_s2 = inlined_call_operand.hbm [shape: bf16[128,256], index: 2, kind: input, shape index: {}]   ;;  %s825_s3 = inlined_call_operand.vmem [shape: f32[1,256], index: 3, kind: input, shape index: {}]   ;;  %s826_s4 = inlined_call_operand.hbm [shape: f32[56,128], index: 4, kind: output, shape index: {0}]   ;;  %s827_s5 = inlined_call_operand.hbm [shape: f32[1,8,128], index: 5, kind: output, shape index: {1}]  }
   0x1   :  { %12 = vsyncpa [#allocation6], 0 }
   0x2   :  { %13 = vsyncpa [#allocation4], 0  ;;  %s32_s20 = sshll.u32 %s823_s1, 4  ;;  %s33_s20 = int_to_ptr.hbm [resolvable:$true] %s32_s20 }
   0x3   :  { %14 = vsyncpa [#allocation10], 0  ;;  %s722_s21 = smov [#allocation5]   ;;  %s19_s25 = sshll.u32 %s822_s0, 4  ;;  %s20_s25 = int_to_ptr.hbm [resolvable:$true] %s19_s25 }
   0x4   :  { %s34_s22 = sshll.u32 %s722_s21, 4  ;;  %s723_s26 = smov 128   ;;  %s35_s22 = int_to_ptr.vmem [resolvable:$true] %s34_s22 }
   0x5   :  { %s724_s27 = smov 8   ;;  %s725_s28 = smov [#allocation2]  }
   0x6   :  { %40 = dma.hbm_to_vmem [thread:$0]  %s33_s20, 896, %s35_s22, [#allocation6], %s723_s26, %s723_s26, %s724_s27  }
   0x7   :  { %s21_s29 = sshll.u32 %s725_s28, 4  ;;  %s726_s1 = smov 64   ;;  %s22_s29 = int_to_ptr.vmem [resolvable:$true] %s21_s29 }
   0x8   :  { %s727_s30 = smov 4   ;;  %s45_s8 = sshll.u32 %s824_s2, 4  ;;  %s46_s8 = int_to_ptr.hbm [resolvable:$true] %s45_s8 }
   0x9   :  { %27 = dma.hbm_to_vmem [thread:$0]  %s20_s25, 448, %s22_s29, [#allocation3], %s726_s1, %s726_s1, %s727_s30  }
   0xa   :  { %s728_s9 = smov [#allocation7]  }
   0xb   :  { %s47_s0 = sshll.u32 %s728_s9, 4  ;;  %s48_s0 = int_to_ptr.vmem [resolvable:$true] %s47_s0 }
   0xc   :  { %53 = dma.hbm_to_vmem [thread:$0]  %s46_s8, 2048, %s48_s0, [#allocation6], %s723_s26, %s723_s26, %s724_s27  }
   0xd   :  { %714 = dma.done.wait [#allocation3], 448  }
   0xe   :  { %715 = vsyncadd [#allocation3], 4294966848 }
   0xf   :  { %716 = dma.done.wait [#allocation6], 2944  }
  0x10   :  { %717 = vsyncadd [#allocation6], 4294964352  ;;  %v514_v0 = vld [vmem:[#allocation7 + $0x70] sm:$0xf]  ;;  %v538_v1 = vld [vmem:[#allocation7 + $0x74] sm:$0xf0] }
  0x11   :  { %v537_v2 = vld [vmem:[#allocation7 + $0x74] sm:$0xf]  ;;  %v515_v3 = vor.u32 %v538_v1, %v514_v0  ;;  %v516_v4 = vld [vmem:[#allocation7 + $0x78] sm:$0xf0]  ;;  %v506_v5 = vld [vmem:[#allocation7 + $0x60] sm:$0xf] }
  0x12   :  { %v536_v6 = vld [vmem:[#allocation7 + $0x64] sm:$0xf0]  ;;  %v519_v7 = vor.u32 %v537_v2, %v516_v4  ;;  %v535_v8 = vld [vmem:[#allocation7 + $0x64] sm:$0xf]  ;;  %v508_v9 = vld [vmem:[#allocation7 + $0x68] sm:$0xf0] }
  0x13   :  { %199 = vmatpush.bf16.msra.mxu0 %v515_v3  ;;  %539 = vmatpush.bf16.msra.mxu2 %v515_v3  ;;  %v507_v10 = vor.u32 %v536_v6, %v506_v5  ;;  %v511_v11 = vor.u32 %v535_v8, %v508_v9  ;;  %v498_v12 = vld [vmem:[#allocation7 + $0x50] sm:$0xf]  ;;  %v534_v13 = vld [vmem:[#allocation7 + $0x54] sm:$0xf0]  ;;  %v533_v14 = vld [vmem:[#allocation7 + $0x54] sm:$0xf] }
  0x14   :  { %227 = vmatpush.bf16.msra.mxu1 %v519_v7  ;;  %547 = vmatpush.bf16.msra.mxu3 %v519_v7  ;;  %v500_v15 = vld [vmem:[#allocation7 + $0x58] sm:$0xf0]  ;;  %v499_v16 = vor.u32 %v534_v13, %v498_v12  ;;  %v490_v18 = vld [vmem:[#allocation7 + $0x40] sm:$0xf]  ;;  %v532_v19 = vld [vmem:[#allocation7 + $0x44] sm:$0xf0] }
  0x15   :  { %v503_v17 = vor.u32 %v533_v14, %v500_v15  ;;  %v531_v20 = vld [vmem:[#allocation7 + $0x44] sm:$0xf]  ;;  %v492_v21 = vld [vmem:[#allocation7 + $0x48] sm:$0xf0]  ;;  %v491_v22 = vor.u32 %v532_v19, %v490_v18  ;;  %v482_v24 = vld [vmem:[#allocation7 + $0x30] sm:$0xf] }
  0x16   :  { %v495_v23 = vor.u32 %v531_v20, %v492_v21  ;;  %v530_v25 = vld [vmem:[#allocation7 + $0x34] sm:$0xf0]  ;;  %v529_v26 = vld [vmem:[#allocation7 + $0x34] sm:$0xf]  ;;  %v484_v27 = vld [vmem:[#allocation7 + $0x38] sm:$0xf0] }
  0x17   :  { %200 = vmatpush.bf16.msra.mxu0 %v507_v10  ;;  %540 = vmatpush.bf16.msra.mxu2 %v507_v10  ;;  %v483_v28 = vor.u32 %v530_v25, %v482_v24  ;;  %v487_v29 = vor.u32 %v529_v26, %v484_v27  ;;  %v474_v30 = vld [vmem:[#allocation7 + $0x20] sm:$0xf]  ;;  %v528_v31 = vld [vmem:[#allocation7 + $0x24] sm:$0xf0]  ;;  %v527_v32 = vld [vmem:[#allocation7 + $0x24] sm:$0xf] }
  0x18   :  { %228 = vmatpush.bf16.msra.mxu1 %v511_v11  ;;  %548 = vmatpush.bf16.msra.mxu3 %v511_v11  ;;  %v476_v33 = vld [vmem:[#allocation7 + $0x28] sm:$0xf0]  ;;  %v475_v34 = vor.u32 %v528_v31, %v474_v30  ;;  %v466_v36 = vld [vmem:[#allocation7 + $0x10] sm:$0xf]  ;;  %v526_v37 = vld [vmem:[#allocation7 + $0x14] sm:$0xf0] }
  0x19   :  { %v479_v35 = vor.u32 %v527_v32, %v476_v33  ;;  %v525_v38 = vld [vmem:[#allocation7 + $0x14] sm:$0xf]  ;;  %v468_v39 = vld [vmem:[#allocation7 + $0x18] sm:$0xf0]  ;;  %v467_v40 = vor.u32 %v526_v37, %v466_v36  ;;  %v458_v42 = vld [vmem:[#allocation7] sm:$0xf] }
  0x1a   :  { %v471_v41 = vor.u32 %v525_v38, %v468_v39  ;;  %v524_v43 = vld [vmem:[#allocation7 + $0x4] sm:$0xf0]  ;;  %v523_v44 = vld [vmem:[#allocation7 + $0x4] sm:$0xf]  ;;  %v460_v45 = vld [vmem:[#allocation7 + $0x8] sm:$0xf0] }
  0x1b   :  { %201 = vmatpush.bf16.msra.mxu0 %v499_v16  ;;  %541 = vmatpush.bf16.msra.mxu2 %v499_v16  ;;  %v459_v46 = vor.u32 %v524_v43, %v458_v42  ;;  %v463_v47 = vor.u32 %v523_v44, %v460_v45  ;;  %v520_v48 = vld [vmem:[#allocation2] sm:$0xff]  ;;  %v522_v49 = vld [vmem:[#allocation2 + $0x10] sm:$0xff]  ;;  %v74_v50 = vld [vmem:[#allocation2 + $0x18] sm:$0xf]  ;;  %s414_s14 = sshll.u32 %s826_s4, 4  ;;  %s730_s15 = smov [#allocation9]   ;;  %s415_s14 = int_to_ptr.hbm [resolvable:$true] %s414_s14 }
  0x1c   :  { %229 = vmatpush.bf16.msra.mxu1 %v503_v17  ;;  %549 = vmatpush.bf16.msra.mxu3 %v503_v17  ;;  %v110_v51 = vunpack.c.l.b16 %v74_v50  ;;  %v521_v52 = vld [vmem:[#allocation2 + $0x8] sm:$0xff]  ;;  %v91_v54 = vld [vmem:[%s825_s3] sm:$0x3]  ;;  %s729_s3 = smov [#allocation8]   ;;  %s426_s16 = sshll.u32 %s730_s15, 4  ;;  %s427_s16 = int_to_ptr.vmem [resolvable:$true] %s426_s16 }
  0x1d   :  { %v779_v55 = vperm.slane %v91_v54, 1  ;;  %v787_v4 = vperm.slane %v91_v54, 0  ;;  %v276_v5 = vld [vmem:[#allocation5] sm:$0xff]  ;;  %v277_v27 = vld [vmem:[#allocation5 + $0x8] sm:$0xff]  ;;  %s412_s11 = sshll.u32 %s729_s3, 4  ;;  %s428_s4 = sshll.u32 %s827_s5, 4  ;;  %s413_s11 = int_to_ptr.vmem [resolvable:$true] %s412_s11  ;;  %s429_s4 = int_to_ptr.hbm [resolvable:$true] %s428_s4 }
  0x1e   :  { %v114_v53 = vpack.c.b16 %v110_v51, %v110_v51  ;;  %v280_v20 = vld [vmem:[#allocation5 + $0x20] sm:$0xff]  ;;  %v281_v50 = vld [vmem:[#allocation5 + $0x28] sm:$0xff] }
  0x1f   :  { %202 = vmatpush.bf16.msra.mxu0 %v491_v22  ;;  %542 = vmatpush.bf16.msra.mxu2 %v491_v22 }
  0x20   :  { %230 = vmatpush.bf16.msra.mxu1 %v495_v23  ;;  %550 = vmatpush.bf16.msra.mxu3 %v495_v23 }
  0x23   :  { %203 = vmatpush.bf16.msra.mxu0 %v483_v28  ;;  %543 = vmatpush.bf16.msra.mxu2 %v483_v28 }
  0x24   :  { %231 = vmatpush.bf16.msra.mxu1 %v487_v29  ;;  %551 = vmatpush.bf16.msra.mxu3 %v487_v29 }
  0x27   :  { %204 = vmatpush.bf16.msra.mxu0 %v475_v34  ;;  %544 = vmatpush.bf16.msra.mxu2 %v475_v34 }
  0x28   :  { %232 = vmatpush.bf16.msra.mxu1 %v479_v35  ;;  %552 = vmatpush.bf16.msra.mxu3 %v479_v35 }
  0x2b   :  { %205 = vmatpush.bf16.msra.mxu0 %v467_v40  ;;  %545 = vmatpush.bf16.msra.mxu2 %v467_v40 }
  0x2c   :  { %233 = vmatpush.bf16.msra.mxu1 %v471_v41  ;;  %553 = vmatpush.bf16.msra.mxu3 %v471_v41 }
  0x2f   :  { %206 = vmatpush.bf16.msra.mxu0 %v459_v46  ;;  %546 = vmatpush.bf16.msra.mxu2 %v459_v46 }
  0x30   :  { %234 = vmatpush.bf16.msra.mxu1 %v463_v47  ;;  %554 = vmatpush.bf16.msra.mxu3 %v463_v47 }
  0x32   :  { %207 = vmatmul.bf16.vlgmr.msra.gmra.mxu0 %v520_v48  ;;  %217 = vmatmul.bf16.vlgmr.msra.gmra.mxu2 %v522_v49 }
  0x33   :  { %235 = vmatmul.bf16.vlgmr.msra.gmra.mxu1 %v520_v48  ;;  %245 = vmatmul.bf16.vlgmr.msra.gmra.mxu3 %v522_v49  ;;  %v346_v48 = vlaneseq }
  0x42   :  { %212 = vmatmul.bf16.gmra.mxu0 %v521_v52  ;;  %222 = vmatmul.bf16.gmra.mxu2 %v114_v53 }
  0x43   :  { %240 = vmatmul.bf16.gmra.mxu1 %v521_v52  ;;  %250 = vmatmul.bf16.gmra.mxu3 %v114_v53 }
  0xaf   :  { %v208_v56 = vpop.f32.mrf.mxu0 }
  0xb0   :  { %v236_v57 = vpop.f32.mrf.mxu1  ;;  %v209_v11 = vadd.f32 %v208_v56, %v787_v4 }
  0xb1   :  { %v237_v58 = vadd.f32 %v236_v57, %v779_v55 }
  0xb2   :  { %v796_v24 = vmul.f32 %v209_v11, %v209_v11 }
  0xb3   :  { %v255_v59 = vmul.f32 0.5, %v237_v58  ;;  %v325_v14 = vmul.f32 1.442695, %v237_v58  ;;  %v798_v26 = vadd.f32 1.0, %v237_v58 }
  0xb5   :  { %v262_v60 = vmul.f32 1.442695, %v255_v59  ;;  %v218_v61 = vpop.f32.mrf.mxu2  ;;  %v318_v44 = vsub.f32 %v798_v26, %v796_v24  ;;  %v282_v24 = vld [vmem:[#allocation5 + $0x30] sm:$0xff] }
  0xb6   :  { %v246_v62 = vpop.f32.mrf.mxu3  ;;  %v219_v30 = vadd.f32 %v218_v61, %v787_v4  ;;  %v278_v61 = vld [vmem:[#allocation5 + $0x10] sm:$0xff] }
  0xb7   :  { %566 = vpow2.f32 %v262_v60  ;;  %v783_v63 = vadd.f32 %v246_v62, %v779_v55  ;;  %v210_v0 = vpop.f32.mrf.mxu0 }
  0xb8   :  { %v238_v1 = vpop.f32.mrf.mxu1  ;;  %v211_v21 = vadd.f32 %v210_v0, %v787_v4 }
  0xb9   :  { %v259_v2 = vmul.f32 0.5, %v783_v63  ;;  %v239_v3 = vadd.f32 %v238_v1, %v779_v55  ;;  %v333_v34 = vmul.f32 1.442695, %v783_v63 }
  0xba   :  { %v312_v35 = vmul.f32 %v211_v21, %v211_v21 }
  0xbb   :  { %v270_v6 = vmul.f32 1.442695, %v259_v2  ;;  %v256_v7 = vmul.f32 0.5, %v239_v3  ;;  %v327_v18 = vmul.f32 1.442695, %v239_v3  ;;  %v305_v40 = vadd.f32 1.0, %v239_v3 }
  0xbd   :  { %v567_v8 = vpop.eup %566  ;;  %568 = vpow2.f32 %v270_v6  ;;  %v264_v9 = vmul.f32 1.442695, %v256_v7  ;;  %v220_v10 = vpop.f32.mrf.mxu2  ;;  %v319_v56 = vsub.f32 %v305_v40, %v312_v35  ;;  %v315_v7 = vmul.f32 %v219_v30, %v219_v30 }
  0xbe   :  { %v283_v12 = vmul.f32 %v567_v8, %v276_v5  ;;  %v248_v13 = vpop.f32.mrf.mxu3  ;;  %v221_v57 = vadd.f32 %v220_v10, %v787_v4  ;;  %v308_v8 = vadd.f32 1.0, %v783_v63 }
  0xbf   :  { %570 = vpow2.f32 %v264_v9  ;;  %v791_v15 = vadd.f32 %v248_v13, %v779_v55  ;;  %v213_v16 = vpop.f32.mrf.mxu0 }
  0xc0   :  { %v290_v17 = vadd.f32 %v283_v12, %v209_v11  ;;  %v241_v19 = vpop.f32.mrf.mxu1  ;;  %572 = vpow2.f32 %v325_v14  ;;  %v214_v41 = vadd.f32 %v213_v16, %v787_v4 }
  0xc1   :  { %v260_v22 = vmul.f32 0.5, %v791_v15  ;;  %v242_v23 = vadd.f32 %v241_v19, %v779_v55  ;;  %574 = vpow2.f32 %v327_v18  ;;  %v335_v58 = vmul.f32 1.442695, %v791_v15 }
  0xc2   :  { %297 = vst [vmem:[#allocation8] sm:$0xff] %v290_v17  ;;  %v313_v59 = vmul.f32 %v214_v41, %v214_v41 }
  0xc3   :  { %v569_v25 = vpop.eup %568  ;;  %v272_v28 = vmul.f32 1.442695, %v260_v22  ;;  %v257_v29 = vmul.f32 0.5, %v242_v23  ;;  %v329_v32 = vmul.f32 1.442695, %v242_v23  ;;  %v306_v62 = vadd.f32 1.0, %v242_v23 }
  0xc4   :  { %v287_v31 = vmul.f32 %v569_v25, %v280_v20  ;;  %v347_v25 = vshrl.u32 %v346_v48, 7 }
  0xc5   :  { %v571_v33 = vpop.eup %570  ;;  %576 = vpow2.f32 %v272_v28  ;;  %v266_v36 = vmul.f32 1.442695, %v257_v29  ;;  %v223_v37 = vpop.f32.mrf.mxu2  ;;  %v320_v18 = vsub.f32 %v306_v62, %v313_v59  ;;  %v316_v29 = vmul.f32 %v221_v57, %v221_v57 }
  0xc6   :  { %v294_v38 = vadd.f32 %v287_v31, %v219_v30  ;;  %v284_v39 = vmul.f32 %v571_v33, %v277_v27  ;;  %v251_v42 = vpop.f32.mrf.mxu3  ;;  %v573_v49 = vpop.eup %572  ;;  %v322_v27 = vsub.f32 %v308_v8, %v315_v7  ;;  %v309_v30 = vadd.f32 1.0, %v791_v15  ;;  %v279_v31 = vld [vmem:[#allocation5 + $0x18] sm:$0xff] }
  0xc7   :  { %578 = vpow2.f32 %v266_v36  ;;  %v252_v43 = vadd.f32 %v251_v42, %v779_v55  ;;  %v215_v46 = vpop.f32.mrf.mxu0  ;;  %v575_v54 = vpop.eup %574  ;;  %v339_v63 = vsub.f32 %v318_v44, %v573_v49 }
  0xc8   :  { %301 = vst [vmem:[#allocation8 + $0x20] sm:$0xff] %v294_v38  ;;  %v291_v45 = vadd.f32 %v284_v39, %v211_v21  ;;  %580 = vpow2.f32 %v329_v32  ;;  %v243_v47 = vpop.f32.mrf.mxu1  ;;  %v216_v1 = vadd.f32 %v215_v46, %v787_v4  ;;  %v340_v12 = vsub.f32 %v319_v56, %v575_v54 }
  0xc9   :  { %582 = vpow2.f32 %v333_v34  ;;  %v261_v51 = vmul.f32 0.5, %v252_v43  ;;  %v337_v52 = vmul.f32 1.442695, %v252_v43  ;;  %v244_v53 = vadd.f32 %v243_v47, %v779_v55 }
  0xca   :  { %298 = vst [vmem:[#allocation8 + $0x8] sm:$0xff] %v291_v45  ;;  %v224_v55 = vadd.f32 %v223_v37, %v787_v4  ;;  %v314_v19 = vmul.f32 %v216_v1, %v216_v1  ;;  %v310_v21 = vadd.f32 1.0, %v252_v43  ;;  %v391_v33 = vadd.f32 %v340_v12, %v339_v63 }
  0xcb   :  { %v577_v60 = vpop.eup %576  ;;  %v274_v0 = vmul.f32 1.442695, %v261_v51  ;;  %v258_v2 = vmul.f32 0.5, %v244_v53  ;;  %584 = vpow2.f32 %v337_v52  ;;  %v331_v5 = vmul.f32 1.442695, %v244_v53 }
  0xcc   :  { %v288_v3 = vmul.f32 %v577_v60, %v281_v50  ;;  %v307_v20 = vadd.f32 1.0, %v244_v53  ;;  %v317_v22 = vmul.f32 %v224_v55, %v224_v55  ;;  %v353_v39 = vadd.s32 48, %v347_v25 }
  0xcd   :  { %v579_v6 = vpop.eup %578  ;;  %586 = vpow2.f32 %v274_v0  ;;  %v268_v9 = vmul.f32 1.442695, %v258_v2  ;;  %v225_v10 = vpop.f32.mrf.mxu2  ;;  %v323_v44 = vsub.f32 %v309_v30, %v316_v29 }
  0xce   :  { %v581_v11 = vpop.eup %580  ;;  %v295_v13 = vadd.f32 %v288_v3, %v221_v57  ;;  %v285_v14 = vmul.f32 %v579_v6, %v278_v61  ;;  %588 = vpow2.f32 %v331_v5  ;;  %v253_v16 = vpop.f32.mrf.mxu3  ;;  %v321_v32 = vsub.f32 %v307_v20, %v314_v19 }
  0xcf   :  { %v583_v17 = vpop.eup %582  ;;  %590 = vpow2.f32 %v268_v9  ;;  %v341_v23 = vsub.f32 %v320_v18, %v581_v11  ;;  %v324_v36 = vsub.f32 %v310_v21, %v317_v22  ;;  %vm369_vm0 = vcmp.lt.s32.totalorder %v353_v39, 50 }
  0xd0   :  { %302 = vst [vmem:[#allocation8 + $0x28] sm:$0xff] %v295_v13  ;;  %592 = vpow2.f32 %v335_v58  ;;  %v292_v4 = vadd.f32 %v285_v14, %v214_v41  ;;  %v343_v45 = vsub.f32 %v322_v27, %v583_v17 }
  0xd1   :  { %v585_v26 = vpop.eup %584  ;;  %v392_v40 = vadd.f32 %v391_v33, %v341_v23 }
  0xd2   :  { %299 = vst [vmem:[#allocation8 + $0x10] sm:$0xff] %v292_v4  ;;  %v345_v48 = vsub.f32 %v324_v36, %v585_v26 }
  0xd3   :  { %v587_v28 = vpop.eup %586 }
  0xd4   :  { %v589_v34 = vpop.eup %588  ;;  %v289_v35 = vmul.f32 %v587_v28, %v282_v24  ;;  %v390_v51 = vsel %vm369_vm0, %v345_v48, 0.0 }
  0xd5   :  { %v591_v37 = vpop.eup %590  ;;  %v342_v38 = vsub.f32 %v321_v32, %v589_v34 }
  0xd6   :  { %v593_v41 = vpop.eup %592  ;;  %v286_v42 = vmul.f32 %v591_v37, %v279_v31  ;;  %v296_v43 = vadd.f32 %v289_v35, %v224_v55 }
  0xd7   :  { %v393_v46 = vadd.f32 %v392_v40, %v342_v38  ;;  %v344_v15 = vsub.f32 %v323_v44, %v593_v41 }
  0xd8   :  { %v293_v47 = vadd.f32 %v286_v42, %v216_v1  ;;  %303 = vst [vmem:[#allocation8 + $0x30] sm:$0xff] %v296_v43 }
  0xd9   :  { %v394_v49 = vadd.f32 %v393_v46, %v343_v45 }
  0xda   :  { %300 = vst [vmem:[#allocation8 + $0x18] sm:$0xff] %v293_v47 }
  0xdb   :  { %v395_v50 = vadd.f32 %v394_v49, %v344_v15  ;;  %420 = dma.vmem_to_hbm [thread:$0]  %s413_s11, 896, %s415_s14, [#allocation4], %s723_s26, %s723_s26, %s724_s27  }
  0xdd   :  { %v396_v52 = vadd.f32 %v395_v50, %v390_v51 }
  0xdf   :  { %397 = vadd.xlane.f32.xlu0 %v396_v52 }
 0x152   :  { %v398_v53 = vpop.xlane.xlu0 %397 }
 0x153   :  { %v399_v54 = vrot.slane %v398_v53, 4 }
 0x155   :  { %v400_v56 = vadd.f32 %v399_v54, %v398_v53 }
 0x157   :  { %v401_v57 = vrot.slane %v400_v56, 2 }
 0x159   :  { %v402_v58 = vadd.f32 %v401_v57, %v400_v56 }
 0x15b   :  { %v403_v59 = vrot.slane %v402_v58, 1 }
 0x15d   :  { %v404_v60 = vadd.f32 %v403_v59, %v402_v58 }
 0x15f   :  { %555 = vpush %v404_v60 }
 0x190   :  { %s556_s19 = spop %555 }
 0x191   :  { %v406_v61 = vstv %s556_s19 }
 0x192   :  { %407 = vst [vmem:[#allocation9] sm:$0xff] %v406_v61 }
 0x193   :  { %431 = dma.vmem_to_hbm [thread:$0]  %s427_s16, 128, %s429_s4, [#allocation10]  }
 0x194   :  { %718 = dma.done.wait [#allocation4], 896  }
 0x195   :  { %719 = vsyncadd [#allocation4], 4294966400 }
 0x196   :  { %720 = dma.done.wait [#allocation10], 128  }
 0x197   :  { %721 = vsyncadd [#allocation10], 4294967168 }
 0x198   :  { %440 = vsyncpa [#allocation3], 1 }
 0x199   :  { %441 = vsyncpa [#allocation6], 1 }
 0x19a   :  { %442 = vsyncpa [#allocation4], 1 }
 0x19b   :  { %443 = vsyncpa [#allocation10], 1 }

</bundles_post_ra>
